<compile_context>
chip_gen: v7x
topology: tpu7x:2x2x1
jax: 0.10.0
libtpu: 0.0.40
codegen_flags: <defaults>
</compile_context>

<pallas_src>
import math
from functools import partial

import jax
import jax.numpy as jnp
from jax import lax
from jax.experimental import pallas as pl
from jax.experimental.pallas import tpu as pltpu


def _round_up(a, m):
    return -(-a // m) * m


# --------------------------------------------------------------------------- kernel
def _cross_attn_kernel(x_ref, wq_ref, wkv_ref, seg_ref, wp_ref, bp_ref, o_ref,
                       *, num_heads, n_valid, kv_dtype):
    TB, N, C = x_ref.shape                      # padded token / channel extents

    x = x_ref[...]                              # (TB, N, C), native dtype
    x_flat = x.reshape(TB * N, C)

    # Q projection (first token only); scale is already folded into Wq^T.
    q = jnp.dot(x[:, 0, :], wq_ref[...],
                preferred_element_type=jnp.float32)                     # (TB, C) f32
    q = q.astype(kv_dtype)

    # Fused K/V projection: one GEMM against [Wk^T | Wv^T].
    kv = jnp.dot(x_flat, wkv_ref[...],
                 preferred_element_type=jnp.float32).astype(kv_dtype)   # (TB*N, 2C)
    k = kv[:, :C].reshape(TB, N, C)             # lane-aligned slice (C % 128 == 0)
    v = kv[:, C:].reshape(TB, N, C)

    # All-head logits via the head-segment matrix seg (H, C):
    #   logits[b, n, h] = sum_{c in head h} q[b, c] * k[b, n, c]
    qk = k * q[:, None, :]                                              # (TB, N, C)
    seg = seg_ref[...]                                                  # (H, C)
    logits = lax.dot_general(
        qk.reshape(TB * N, C), seg,
        dimension_numbers=(((1,), (1,)), ((), ())),
        preferred_element_type=jnp.float32).reshape(TB, N, num_heads)
    # TODO(synk): for C <= ~512 the two seg matmuls waste MXU width; an XLU
    # segment-reduce / lane-broadcast variant would free the MXU but needs a
    # lane-axis relayout — kept on the MXU for simplicity/correctness.

    if n_valid < N:  # static: mask zero-padded tokens out of the softmax
        tok = lax.broadcasted_iota(jnp.int32, (TB, N, num_heads), 1)
        logits = jnp.where(tok < n_valid, logits, jnp.float32(-1e30))

    # Softmax over tokens (axis=1), in f32; denominator on the EUP (approx recip).
    m = jnp.max(logits, axis=1, keepdims=True)                          # (TB, 1, H)
    e = jnp.exp(logits - m)                                             # (TB, N, H)
    s = jnp.sum(e, axis=1, keepdims=True)                               # (TB, 1, H)
    p = e * pl.reciprocal(s, approx=True)                               # (TB, N, H)

    # Expand head weights back to channels (second small MXU matmul) and combine
    # with V; accumulation stays f32.
    p_exp = jnp.dot(p.reshape(TB * N, num_heads).astype(seg.dtype), seg,
                    preferred_element_type=jnp.float32)                 # (TB*N, C)
    out = jnp.sum(p_exp.reshape(TB, N, C) * v.astype(jnp.float32), axis=1)  # (TB, C)

    # Output projection (+ bias).
    y = jnp.dot(out.astype(wp_ref.dtype), wp_ref[...],
                preferred_element_type=jnp.float32) + bp_ref[...].astype(jnp.float32)
    o_ref[...] = y.astype(o_ref.dtype)


# ------------------------------------------------------------------- one-time prep
def prepare_cross_attention_params(wq, wk, wv, wp, bp, *, num_heads,
                                   compute_dtype=None):
    """One-time weight preparation (hoist out of the per-call hot path).

    Weights are in PyTorch Linear (out, in) layout, y = x @ W^T + b.  Returns
    pre-transposed, zero-padded (C -> multiple of 128) tensors plus the head
    segment matrix.  `compute_dtype=jnp.bfloat16` enables the bf16 intermediate
    path (recommended on v6e / v7x; keep f32 / default on v5e).
    """
    C = wq.shape[0]
    head_dim = C // num_heads
    scale = head_dim ** (-0.5)
    C_pad = _round_up(C, 128)
    if compute_dtype is None:
        compute_dtype = wq.dtype
    compute_dtype = jnp.dtype(compute_dtype)

    def pad2(w):
        return jnp.pad(w, ((0, C_pad - C), (0, C_pad - C)))

    wq_t = pad2(wq).T * jnp.asarray(scale, wq.dtype)            # (C_pad, C_pad), scale folded
    wkv_t = jnp.concatenate([pad2(wk).T, pad2(wv).T], axis=1)   # (C_pad, 2*C_pad)
    wp_t = pad2(wp).T                                           # (C_pad, C_pad)
    bp2 = jnp.pad(bp, (0, C_pad - C)).reshape(1, C_pad)

    # seg[h, c] = 1 iff channel c belongs to head h; padded channels map to no head.
    head_ids = jnp.arange(C_pad, dtype=jnp.int32) // head_dim
    seg = (head_ids[None, :] == jnp.arange(num_heads, dtype=jnp.int32)[:, None]
           ).astype(compute_dtype)                              # (H, C_pad)

    return dict(wq_t=wq_t, wkv_t=wkv_t, seg=seg, wp_t=wp_t, bp=bp2,
                num_heads=num_heads, C=C, C_pad=C_pad, compute_dtype=compute_dtype)


# ---------------------------------------------------------------------- entry point
def cross_attention(x, params, *, batch_tile=None,
                    vmem_budget_bytes=40 << 20, target_rows=1024):
    """x: (B, N, C) -> (B, 1, C) using weights from prepare_cross_attention_params."""
    B, N, C = x.shape
    assert C == params["C"], "channel dim mismatch with prepared weights"
    num_heads = params["num_heads"]
    C_pad = params["C_pad"]
    kv_dtype = params["compute_dtype"]

    N_pad = _round_up(N, 8)
    in_itemsize = x.dtype.itemsize
    kv_itemsize = jnp.dtype(kv_dtype).itemsize

    # ---- batch-tile / VMEM sizing -------------------------------------------
    B8 = _round_up(B, 8)
    row_bytes = (2 * N_pad * C_pad * in_itemsize       # x tile (double buffered)
                 + 2 * C_pad * in_itemsize             # out tile (double buffered)
                 + 2 * N_pad * C_pad * kv_itemsize     # kv (k & v halves)
                 + 2 * N_pad * C_pad * kv_itemsize     # qk + slack
                 + 2 * N_pad * C_pad * 4)              # f32 p_exp / weighted
    weight_bytes = ((4 * C_pad * C_pad + 2 * C_pad) * in_itemsize
                    + num_heads * C_pad * kv_itemsize)
    if batch_tile is not None:
        TB = _round_up(batch_tile, 8)
    else:
        avail = max(vmem_budget_bytes - weight_bytes, 8 * row_bytes)
        tb_vmem = max(8, (avail // row_bytes) // 8 * 8)
        tb_rows = _round_up(max(8, pl.cdiv(target_rows, N_pad)), 8)
        TB = int(min(tb_rows, tb_vmem))
    TB = min(TB, B8)
    if B8 > 8:
        # Keep >= 2 grid steps so the "parallel" batch axis shards across both
        # TensorCores on v7x (harmless on single-TC v5e/v6e).
        TB = min(TB, max(8, _round_up(B8 // 2, 8)))
    B_pad = _round_up(B, TB)

    footprint = weight_bytes + TB * row_bytes
    vmem_limit = int(min(48 << 20, max(int(footprint * 1.5), 16 << 20)))

    # ---- input padding: batch -> TB, tokens -> 8, channels -> 128 ------------
    if (B_pad, N_pad, C_pad) != (B, N, C):
        x = jnp.pad(x, ((0, B_pad - B), (0, N_pad - N), (0, C_pad - C)))

    kernel = partial(_cross_attn_kernel, num_heads=num_heads, n_valid=N,
                     kv_dtype=kv_dtype)

    def _const_spec(shape):
        idx = lambda b: (0,) * len(shape)
        # Constant blocks never change across the grid: single-buffer them to
        # halve resident-weight VMEM (fall back gracefully on older JAX).
        if hasattr(pl, "Buffered"):
            try:
                return pl.BlockSpec(shape, idx, pipeline_mode=pl.Buffered(1))
            except TypeError:
                pass
        return pl.BlockSpec(shape, idx)

    out2d = pl.pallas_call(
        kernel,
        out_shape=jax.ShapeDtypeStruct((B_pad, C_pad), x.dtype),
        grid_spec=pltpu.PrefetchScalarGridSpec(
            num_scalar_prefetch=0,
            grid=(B_pad // TB,),
            in_specs=[
                pl.BlockSpec((TB, N_pad, C_pad), lambda b: (b, 0, 0)),  # x batch tile
                _const_spec((C_pad, C_pad)),            # Wq^T * scale   (resident)
                _const_spec((C_pad, 2 * C_pad)),        # [Wk^T | Wv^T]  (resident)
                _const_spec((num_heads, C_pad)),        # head-segment matrix
                _const_spec((C_pad, C_pad)),            # Wproj^T        (resident)
                _const_spec((1, C_pad)),                # proj bias
            ],
            out_specs=pl.BlockSpec((TB, C_pad), lambda b: (b, 0)),  # lane-dense slab
        ),
        compiler_params=pltpu.CompilerParams(
            dimension_semantics=("parallel",),          # batch shards across TCs
            vmem_limit_bytes=vmem_limit),
    )(x, params["wq_t"], params["wkv_t"], params["seg"], params["wp_t"], params["bp"])

    return out2d[:B, :C].reshape(B, 1, C)


# ------------------------------------------------------------------ pure-JAX reference
def cross_attention_ref(x, wq, wk, wv, wp, bp, *, num_heads):
    """Pure-JAX reference mirroring the PyTorch forward."""
    B, N, C = x.shape
    hd = C // num_heads
    scale = hd ** (-0.5)
    q = (x[:, 0:1, :] @ wq.T).reshape(B, 1, num_heads, hd).transpose(0, 2, 1, 3)
    k = (x @ wk.T).reshape(B, N, num_heads, hd).transpose(0, 2, 1, 3)
    v = (x @ wv.T).reshape(B, N, num_heads, hd).transpose(0, 2, 1, 3)
    attn = (q @ jnp.swapaxes(k, -2, -1)) * scale
    attn = jax.nn.softmax(attn, axis=-1)
    out = (attn @ v).transpose(0, 2, 1, 3).reshape(B, 1, C)
    return out @ wp.T + bp


if __name__ == "__main__":
    B, N, C = 2, 8, 32
    num_heads = 4

    key = jax.random.PRNGKey(0)
    kx, kq, kk, kv, kp, kb, kx2 = jax.random.split(key, 7)

    x = jax.random.normal(kx, (B, N, C), dtype=jnp.float32)
    # Deterministic synthetic parameters (PyTorch Linear layout: (out, in)).
    wq = jax.random.normal(kq, (C, C), dtype=jnp.float32) * 0.05
    wk = jax.random.normal(kk, (C, C), dtype=jnp.float32) * 0.05
    wv = jax.random.normal(kv, (C, C), dtype=jnp.float32) * 0.05
    wp = jax.random.normal(kp, (C, C), dtype=jnp.float32) * 0.05
    bp = jax.random.normal(kb, (C,), dtype=jnp.float32) * 0.01

    # One-time weight prep (hoisted out of the per-call hot path).
    params = prepare_cross_attention_params(wq, wk, wv, wp, bp, num_heads=num_heads)

    # --- main f32 run + correctness check ------------------------------------
    out = jax.block_until_ready(cross_attention(x, params))
    ref = cross_attention_ref(x, wq, wk, wv, wp, bp, num_heads=num_heads)
    assert out.shape == (B, 1, C)
    # Loose-ish tolerance for the EUP approximate reciprocal in the softmax.
    assert jnp.allclose(out, ref, atol=2e-3, rtol=2e-3), "mismatch vs reference"

    # --- ragged shape: exercises token padding (N not multiple of 8) + masking ---
    B2, N2 = 3, 5
    x2 = jax.random.normal(kx2, (B2, N2, C), dtype=jnp.float32)
    out2 = jax.block_until_ready(cross_attention(x2, params))
    ref2 = cross_attention_ref(x2, wq, wk, wv, wp, bp, num_heads=num_heads)
    assert out2.shape == (B2, 1, C)
    assert jnp.allclose(out2, ref2, atol=2e-3, rtol=2e-3), "masked-token mismatch"

    # --- bf16 intermediate path (v6e/v7x optimization) smoke test ----------------
    params_bf16 = prepare_cross_attention_params(
        wq, wk, wv, wp, bp, num_heads=num_heads, compute_dtype=jnp.bfloat16)
    out_bf16 = jax.block_until_ready(cross_attention(x, params_bf16))
    assert out_bf16.shape == (B, 1, C)
    assert bool(jnp.all(jnp.isfinite(out_bf16)))

    print("KERNEL_OK")
</pallas_src>

<mosaic_0001>
module attributes {stable_mosaic.version = 11 : i64} {
  func.func @_cross_attn_kernel(%arg0: i32, %arg1: memref<8x8x128xf32, #tpu.memory_space<vmem>>, %arg2: memref<128x128xf32, #tpu.memory_space<vmem>>, %arg3: memref<128x256xf32, #tpu.memory_space<vmem>>, %arg4: memref<4x128xf32, #tpu.memory_space<vmem>>, %arg5: memref<128x128xf32, #tpu.memory_space<vmem>>, %arg6: memref<1x128xf32, #tpu.memory_space<vmem>>, %arg7: memref<8x128xf32, #tpu.memory_space<vmem>>) attributes {dimension_semantics = [#tpu.dimension_semantics<parallel>], iteration_bounds = array<i64: 1>, scalar_prefetch = 0 : i64, scratch_operands = 0 : i64, tpu.core_type = #tpu.core_type<tc>, window_params = [{transform_indices = @transform_0, window_bounds = array<i64: 8, 8, 128>}, {pipeline_mode = #tpu.pipeline_mode<synchronous>, transform_indices = @transform_1, window_bounds = array<i64: 128, 128>}, {pipeline_mode = #tpu.pipeline_mode<synchronous>, transform_indices = @transform_2, window_bounds = array<i64: 128, 256>}, {pipeline_mode = #tpu.pipeline_mode<synchronous>, transform_indices = @transform_3, window_bounds = array<i64: 4, 128>}, {pipeline_mode = #tpu.pipeline_mode<synchronous>, transform_indices = @transform_4, window_bounds = array<i64: 128, 128>}, {pipeline_mode = #tpu.pipeline_mode<synchronous>, transform_indices = @transform_5, window_bounds = array<i64: 1, 128>}, {transform_indices = @transform_6, window_bounds = array<i64: 8, 128>}]} {
    %c0 = arith.constant 0 : index
    %c0_0 = arith.constant 0 : index
    %c0_1 = arith.constant 0 : index
    %0 = vector.load %arg1[%c0, %c0_0, %c0_1] : memref<8x8x128xf32, #tpu.memory_space<vmem>>, vector<8x8x128xf32>
    %1 = vector.shape_cast %0 : vector<8x8x128xf32> to vector<64x128xf32>
    %2 = vector.extract_strided_slice %0 {offsets = [0, 0, 0], sizes = [8, 1, 128], strides = [1, 1, 1]} : vector<8x8x128xf32> to vector<8x1x128xf32>
    %3 = vector.shape_cast %2 : vector<8x1x128xf32> to vector<8x128xf32>
    %c0_2 = arith.constant 0 : index
    %c0_3 = arith.constant 0 : index
    %4 = vector.load %arg2[%c0_2, %c0_3] : memref<128x128xf32, #tpu.memory_space<vmem>>, vector<128x128xf32>
    %cst = arith.constant dense<0.000000e+00> : vector<8x128xf32>
    %5 = tpu.matmul %3, %4, %cst {dimension_numbers = #tpu.dot_dimension_numbers<[1], [0], [0], [1], [0, 0, 1, 1], [], []>} : vector<8x128xf32>, vector<128x128xf32>, vector<8x128xf32> -> vector<8x128xf32>
    %c0_4 = arith.constant 0 : index
    %c0_5 = arith.constant 0 : index
    %6 = vector.load %arg3[%c0_4, %c0_5] : memref<128x256xf32, #tpu.memory_space<vmem>>, vector<128x256xf32>
    %cst_6 = arith.constant dense<0.000000e+00> : vector<64x256xf32>
    %7 = tpu.matmul %1, %6, %cst_6 {dimension_numbers = #tpu.dot_dimension_numbers<[1], [0], [0], [1], [0, 0, 1, 1], [], []>} : vector<64x128xf32>, vector<128x256xf32>, vector<64x256xf32> -> vector<64x256xf32>
    %8 = vector.extract_strided_slice %7 {offsets = [0, 0], sizes = [64, 128], strides = [1, 1]} : vector<64x256xf32> to vector<64x128xf32>
    %9 = vector.shape_cast %8 : vector<64x128xf32> to vector<8x8x128xf32>
    %10 = vector.extract_strided_slice %7 {offsets = [0, 128], sizes = [64, 128], strides = [1, 1]} : vector<64x256xf32> to vector<64x128xf32>
    %11 = vector.shape_cast %10 : vector<64x128xf32> to vector<8x8x128xf32>
    %12 = vector.shape_cast %5 : vector<8x128xf32> to vector<8x1x128xf32>
    %13 = vector.broadcast %12 : vector<8x1x128xf32> to vector<8x8x128xf32>
    %14 = arith.mulf %9, %13 : vector<8x8x128xf32>
    %c0_7 = arith.constant 0 : index
    %c0_8 = arith.constant 0 : index
    %15 = vector.load %arg4[%c0_7, %c0_8] : memref<4x128xf32, #tpu.memory_space<vmem>>, vector<4x128xf32>
    %16 = vector.shape_cast %14 : vector<8x8x128xf32> to vector<64x128xf32>
    %cst_9 = arith.constant dense<0.000000e+00> : vector<64x4xf32>
    %17 = tpu.matmul %16, %15, %cst_9 {dimension_numbers = #tpu.dot_dimension_numbers<[1], [1], [0], [0], [0, 0, 1, 0], [], []>} : vector<64x128xf32>, vector<4x128xf32>, vector<64x4xf32> -> vector<64x4xf32>
    %18 = vector.shape_cast %17 : vector<64x4xf32> to vector<8x8x4xf32>
    %cst_10 = arith.constant dense<0xFF800000> : vector<8x4xf32>
    %19 = vector.multi_reduction <maximumf>, %18, %cst_10 [1] : vector<8x8x4xf32> to vector<8x4xf32>
    %20 = vector.shape_cast %19 : vector<8x4xf32> to vector<8x1x4xf32>
    %21 = vector.broadcast %20 : vector<8x1x4xf32> to vector<8x8x4xf32>
    %22 = arith.subf %18, %21 : vector<8x8x4xf32>
    %23 = math.exp %22 : vector<8x8x4xf32>
    %cst_11 = arith.constant dense<0.000000e+00> : vector<8x4xf32>
    %24 = vector.multi_reduction <add>, %23, %cst_11 [1] : vector<8x8x4xf32> to vector<8x4xf32>
    %25 = vector.shape_cast %24 : vector<8x4xf32> to vector<8x1x4xf32>
    %26 = tpu.reciprocal %25 {approx = true} : vector<8x1x4xf32> -> vector<8x1x4xf32>
    %27 = vector.broadcast %26 : vector<8x1x4xf32> to vector<8x8x4xf32>
    %28 = arith.mulf %23, %27 : vector<8x8x4xf32>
    %29 = vector.shape_cast %28 : vector<8x8x4xf32> to vector<64x4xf32>
    %cst_12 = arith.constant dense<0.000000e+00> : vector<64x128xf32>
    %30 = tpu.matmul %29, %15, %cst_12 {dimension_numbers = #tpu.dot_dimension_numbers<[1], [0], [0], [1], [0, 0, 1, 1], [], []>} : vector<64x4xf32>, vector<4x128xf32>, vector<64x128xf32> -> vector<64x128xf32>
    %31 = vector.shape_cast %30 : vector<64x128xf32> to vector<8x8x128xf32>
    %32 = arith.mulf %31, %11 : vector<8x8x128xf32>
    %cst_13 = arith.constant dense<0.000000e+00> : vector<8x128xf32>
    %33 = vector.multi_reduction <add>, %32, %cst_13 [1] : vector<8x8x128xf32> to vector<8x128xf32>
    %c0_14 = arith.constant 0 : index
    %c0_15 = arith.constant 0 : index
    %34 = vector.load %arg5[%c0_14, %c0_15] : memref<128x128xf32, #tpu.memory_space<vmem>>, vector<128x128xf32>
    %cst_16 = arith.constant dense<0.000000e+00> : vector<8x128xf32>
    %35 = tpu.matmul %33, %34, %cst_16 {dimension_numbers = #tpu.dot_dimension_numbers<[1], [0], [0], [1], [0, 0, 1, 1], [], []>} : vector<8x128xf32>, vector<128x128xf32>, vector<8x128xf32> -> vector<8x128xf32>
    %c0_17 = arith.constant 0 : index
    %c0_18 = arith.constant 0 : index
    %36 = vector.load %arg6[%c0_17, %c0_18] : memref<1x128xf32, #tpu.memory_space<vmem>>, vector<1x128xf32>
    %37 = vector.broadcast %36 : vector<1x128xf32> to vector<8x128xf32>
    %38 = arith.addf %35, %37 : vector<8x128xf32>
    %c0_19 = arith.constant 0 : index
    %c0_20 = arith.constant 0 : index
    %39 = vector.load %arg7[%c0_19, %c0_20] : memref<8x128xf32, #tpu.memory_space<vmem>>, vector<8x128xf32>
    tpu.vector_store %arg7[%c0_19, %c0_20], %38 {strides = array<i32>} : memref<8x128xf32, #tpu.memory_space<vmem>>, vector<8x128xf32>,
    return
  }
  func.func @transform_0(%arg0: i32) -> (i32, i32, i32) {
    %c0_i32 = arith.constant 0 : i32
    %c0_i32_0 = arith.constant 0 : i32
    %c0_i32_1 = arith.constant 0 : i32
    return %arg0, %c0_i32, %c0_i32_0 : i32, i32, i32
  }
  func.func @transform_1(%arg0: i32) -> (i32, i32) {
    %c0_i32 = arith.constant 0 : i32
    %c0_i32_0 = arith.constant 0 : i32
    %c0_i32_1 = arith.constant 0 : i32
    return %c0_i32, %c0_i32_0 : i32, i32
  }
  func.func @transform_2(%arg0: i32) -> (i32, i32) {
    %c0_i32 = arith.constant 0 : i32
    %c0_i32_0 = arith.constant 0 : i32
    %c0_i32_1 = arith.constant 0 : i32
    return %c0_i32, %c0_i32_0 : i32, i32
  }
  func.func @transform_3(%arg0: i32) -> (i32, i32) {
    %c0_i32 = arith.constant 0 : i32
    %c0_i32_0 = arith.constant 0 : i32
    %c0_i32_1 = arith.constant 0 : i32
    return %c0_i32, %c0_i32_0 : i32, i32
  }
  func.func @transform_4(%arg0: i32) -> (i32, i32) {
    %c0_i32 = arith.constant 0 : i32
    %c0_i32_0 = arith.constant 0 : i32
    %c0_i32_1 = arith.constant 0 : i32
    return %c0_i32, %c0_i32_0 : i32, i32
  }
  func.func @transform_5(%arg0: i32) -> (i32, i32) {
    %c0_i32 = arith.constant 0 : i32
    %c0_i32_0 = arith.constant 0 : i32
    %c0_i32_1 = arith.constant 0 : i32
    return %c0_i32, %c0_i32_0 : i32, i32
  }
  func.func @transform_6(%arg0: i32) -> (i32, i32) {
    %c0_i32 = arith.constant 0 : i32
    %c0_i32_0 = arith.constant 0 : i32
    return %arg0, %c0_i32 : i32, i32
  }
}

</mosaic_0001>

<bundles_post_ra>
// kernel: tpu_custom_call.1
= control target key start
LH: loop header
LB: loop body
LE: loop exit
PB: predicated region body
PF: predicated region fallthrough
CT: control target
= control target key end

     0   :  { %11 = vsyncpa [#allocation3], 0  ;;  %s1690_s0 = inlined_call_operand.hbm [shape: f32[8,8,128], index: 0, kind: input, shape index: {}]   ;;  %s1691_s1 = inlined_call_operand.hbm [shape: f32[128,128], index: 1, kind: input, shape index: {}]   ;;  %s1692_s2 = inlined_call_operand.hbm [shape: f32[128,256], index: 2, kind: input, shape index: {}]   ;;  %s1693_s3 = inlined_call_operand.vmem [shape: f32[4,128], index: 3, kind: input, shape index: {}]   ;;  %s1694_s4 = inlined_call_operand.hbm [shape: f32[128,128], index: 4, kind: input, shape index: {}]   ;;  %s1695_s5 = inlined_call_operand.vmem [shape: f32[1,128], index: 5, kind: input, shape index: {}]   ;;  %s1696_s6 = inlined_call_operand.hbm [shape: f32[8,128], index: 6, kind: output, shape index: {}]  }
   0x1   :  { %12 = vsyncpa [#allocation6], 0 }
   0x2   :  { %13 = vsyncpa [#allocation9], 0 }
   0x3   :  { %14 = vsyncpa [#allocation4], 0  ;;  %s1424_s21 = smov [#allocation5]   ;;  %s1425_s23 = smov [#allocation2]  }
   0x4   :  { %s32_s22 = sshll.u32 %s1424_s21, 4  ;;  %s20_s24 = sshll.u32 %s1425_s23, 4  ;;  %s33_s22 = int_to_ptr.vmem [resolvable:$true] %s32_s22  ;;  %s1472_s24 = int_to_ptr.vmem [resolvable:$true] %s20_s24 }
   0x5   :  { %s1306_s27 = scalar_lea.hbm %s1691_s1, 2048 }
   0x6   :  { %p1307_p0 = scmp.ne.s32.totalorder %s1691_s1, %s1306_s27  ;;  %p1310_p1 = scmp.lt.u32.totalorder %s1306_s27, %s1691_s1 }
   0x8   :  { %p1312_p2 = pnand %p1310_p1, %p1307_p0 }
   0xa   :  { %1315 = shalt.err (!%p1312_p2)
}
   0xb   :  { %s1316_s8 = scalar_lea.vmem %s33_s22, 2048  ;;  %p1321_p4 = scmp.lt.s32.totalorder %s33_s22, %s33_s22 }
   0xc   :  { %p1317_p3 = scmp.ne.s32.totalorder %s33_s22, %s1316_s8  ;;  %p1322_p5 = scmp.lt.s32.totalorder %s1316_s8, %s1316_s8 }
   0xe   :  { %p1323_p6 = por %p1322_p5, %p1321_p4 }
  0x10   :  { %p1324_p7 = pnand %p1323_p6, %p1317_p3 }
  0x12   :  { %1327 = shalt.err (!%p1324_p7)
}
  0x13   :  { %s1426_s9 = smov 128   ;;  %s1427_s10 = smov 8  }
  0x14   :  { %38 = dma.hbm_to_vmem [thread:$0]  %s1691_s1, 2048, %s33_s22, [#allocation6], %s1426_s9, %s1426_s9, %s1427_s10  }
  0x15   :  { %s1328_s15 = scalar_lea.hbm %s1690_s0, 1024 }
  0x16   :  { %p1329_p8 = scmp.ne.s32.totalorder %s1690_s0, %s1328_s15  ;;  %p1332_p9 = scmp.lt.u32.totalorder %s1328_s15, %s1690_s0 }
  0x18   :  { %p1334_p10 = pnand %p1332_p9, %p1329_p8 }
  0x1a   :  { %1337 = shalt.err (!%p1334_p10)
}
  0x1b   :  { %s1338_s20 = scalar_lea.vmem %s1472_s24, 1024  ;;  %p1343_p12 = scmp.lt.s32.totalorder %s1472_s24, %s1472_s24 }
  0x1c   :  { %p1339_p11 = scmp.ne.s32.totalorder %s1472_s24, %s1338_s20  ;;  %p1344_p13 = scmp.lt.s32.totalorder %s1338_s20, %s1338_s20 }
  0x1e   :  { %p1345_p0 = por %p1344_p13, %p1343_p12 }
  0x20   :  { %p1346_p1 = pnand %p1345_p0, %p1339_p11 }
  0x22   :  { %1349 = shalt.err (!%p1346_p1)
}
  0x23   :  { %26 = dma.hbm_to_vmem [thread:$0]  %s1690_s0, 1024, %s1472_s24, [#allocation3], %s1426_s9, %s1426_s9, %s1427_s10  }
  0x24   :  { %s1428_s22 = smov [#allocation7]   ;;  %s1350_s27 = scalar_lea.hbm %s1692_s2, 4096 }
  0x25   :  { %s44_s23 = sshll.u32 %s1428_s22, 4  ;;  %p1351_p2 = scmp.ne.s32.totalorder %s1692_s2, %s1350_s27  ;;  %s45_s23 = int_to_ptr.vmem [resolvable:$true] %s44_s23 }
  0x26   :  { %p1354_p3 = scmp.lt.u32.totalorder %s1350_s27, %s1692_s2 }
  0x28   :  { %p1356_p4 = pnand %p1354_p3, %p1351_p2 }
  0x2a   :  { %1359 = shalt.err (!%p1356_p4)
}
  0x2b   :  { %s1360_s8 = scalar_lea.vmem %s45_s23, 4096  ;;  %p1365_p6 = scmp.lt.s32.totalorder %s45_s23, %s45_s23 }
  0x2c   :  { %p1361_p5 = scmp.ne.s32.totalorder %s45_s23, %s1360_s8  ;;  %p1366_p7 = scmp.lt.s32.totalorder %s1360_s8, %s1360_s8 }
  0x2e   :  { %p1367_p8 = por %p1366_p7, %p1365_p6 }
  0x30   :  { %p1368_p9 = pnand %p1367_p8, %p1361_p5 }
  0x32   :  { %1371 = shalt.err (!%p1368_p9)
}
  0x33   :  { %s1429_s0 = smov 256   ;;  %s1430_s24 = smov 16  }
  0x34   :  { %50 = dma.hbm_to_vmem [thread:$0]  %s1692_s2, 4096, %s45_s23, [#allocation6], %s1429_s0, %s1429_s0, %s1430_s24  }
  0x35   :  { %s1431_s13 = smov [#allocation8]   ;;  %s1372_s17 = scalar_lea.hbm %s1694_s4, 2048 }
  0x36   :  { %s58_s14 = sshll.u32 %s1431_s13, 4  ;;  %p1373_p10 = scmp.ne.s32.totalorder %s1694_s4, %s1372_s17  ;;  %s59_s14 = int_to_ptr.vmem [resolvable:$true] %s58_s14 }
  0x37   :  { %p1376_p11 = scmp.lt.u32.totalorder %s1372_s17, %s1694_s4 }
  0x39   :  { %p1378_p12 = pnand %p1376_p11, %p1373_p10 }
  0x3b   :  { %1381 = shalt.err (!%p1378_p12)
}
  0x3c   :  { %s1382_s21 = scalar_lea.vmem %s59_s14, 2048  ;;  %p1387_p0 = scmp.lt.s32.totalorder %s59_s14, %s59_s14 }
  0x3d   :  { %p1383_p13 = scmp.ne.s32.totalorder %s59_s14, %s1382_s21  ;;  %p1388_p1 = scmp.lt.s32.totalorder %s1382_s21, %s1382_s21 }
  0x3f   :  { %p1389_p2 = por %p1388_p1, %p1387_p0 }
  0x41   :  { %p1390_p3 = pnand %p1389_p2, %p1383_p13 }
  0x43   :  { %1393 = shalt.err (!%p1390_p3)
}
  0x44   :  { %64 = dma.hbm_to_vmem [thread:$0]  %s1694_s4, 2048, %s59_s14, [#allocation9], %s1426_s9, %s1426_s9, %s1427_s10  }
  0x45   :  { %1416 = dma.done.wait [#allocation3], 1024  }
  0x46   :  { %1417 = vsyncadd [#allocation3], 4294966272 }
  0x47   :  { %1418 = dma.done.wait [#allocation6], 6144  }
  0x48   :  { %1419 = vsyncadd [#allocation6], 4294961152 }
  0x49   :  { %1420 = dma.done.wait [#allocation9], 2048  }
  0x4a   :  { %1421 = vsyncadd [#allocation9], 4294965248  ;;  %v1432_v0 = vmov 0.0|0.0   ;;  %vm1433_vm0 = vmmov 0   ;;  %v1434_v1 = vmov 0.0   ;;  %v87_v2 = vld [vmem:[#allocation5] sm:$0xff] }
  0x4b   :  { %1181 = vmatprep.subr.bf16.mxu0 %v1432_v0  ;;  %1115 = vmatprep.mubr.msk.f32.mxu0 %vm1433_vm0, %v1434_v1  ;;  %v88_v3 = vld [vmem:[#allocation5 + $0x8] sm:$0xff]  ;;  %v206_v6 = vld [vmem:[#allocation7 + $0x18] sm:$0xff]  ;;  %v203_v7 = vld [vmem:[#allocation7] sm:$0xff]  ;;  %vm112_vm1 = vcmask 1041409   ;;  %vm115_vm2 = vcmask 1042434   ;;  %vm118_vm3 = vcmask 1043459  }
  0x4c   :  { %299 = vmatprep.mubr.f32.mxu1 %v1434_v1  ;;  %v204_v4 = vld [vmem:[#allocation7 + $0x8] sm:$0xff]  ;;  %v1182_v5 = vpack.c.bf16 %v88_v3, %v87_v2  ;;  %v205_v8 = vld [vmem:[#allocation7 + $0x10] sm:$0xff]  ;;  %v90_v12 = vld [vmem:[#allocation5 + $0x18] sm:$0xff]  ;;  %vm121_vm4 = vcmask 1044484   ;;  %vm124_vm5 = vcmask 1045509   ;;  %vm127_vm6 = vcmask 1046534  }
  0x4d   :  { %v1205_v9 = vpack.c.bf16 %v206_v6, %v204_v4  ;;  %v1207_v10 = vpack.c.bf16 %v205_v8, %v203_v7  ;;  %v89_v11 = vld [vmem:[#allocation5 + $0x10] sm:$0xff]  ;;  %v208_v13 = vld [vmem:[#allocation7 + $0x28] sm:$0xff]  ;;  %v210_v15 = vld [vmem:[#allocation7 + $0x38] sm:$0xff]  ;;  %vm130_vm7 = vcmask 1047559   ;;  %vm729_vm8 = vcmask 1043456   ;;  %s1436_s23 = smov [#allocation10]  }
  0x4e   :  { %1183 = vmatpush3.bf16.msra.mxu0 %v1182_v5  ;;  %v1185_v14 = vpack.c.bf16 %v90_v12, %v89_v11  ;;  %v207_v16 = vld [vmem:[#allocation7 + $0x20] sm:$0xff]  ;;  %v209_v17 = vld [vmem:[#allocation7 + $0x30] sm:$0xff]  ;;  %v1209_v18 = vpack.c.bf16 %v210_v15, %v208_v13  ;;  %v92_v20 = vld [vmem:[#allocation5 + $0x28] sm:$0xff]  ;;  %vm552_vm9 = vcmask 31744   ;;  %s1010_s25 = sshll.u32 %s1436_s23, 4  ;;  %s1011_s25 = int_to_ptr.vmem [resolvable:$true] %s1010_s25 }
  0x4f   :  { %1206 = vmatprep.subr.bf16.mxu1 %v1205_v9  ;;  %1184 = vmatprep.subr.bf16.mxu0 %v1432_v0  ;;  %v91_v19 = vld [vmem:[#allocation5 + $0x20] sm:$0xff]  ;;  %v212_v21 = vld [vmem:[#allocation7 + $0x48] sm:$0xff]  ;;  %v1211_v22 = vpack.c.bf16 %v209_v17, %v207_v16  ;;  %v214_v23 = vld [vmem:[#allocation7 + $0x58] sm:$0xff]  ;;  %s1394_s26 = scalar_lea.vmem %s1011_s25, 128  ;;  %p1399_p5 = scmp.lt.s32.totalorder %s1011_s25, %s1011_s25 }
  0x50   :  { %1208 = vmatpush1.bf16.msra.mxu1 %v1207_v10  ;;  %v1213_v24 = vpack.c.bf16 %v214_v23, %v212_v21  ;;  %v211_v25 = vld [vmem:[#allocation7 + $0x40] sm:$0xff]  ;;  %v213_v26 = vld [vmem:[#allocation7 + $0x50] sm:$0xff]  ;;  %v1188_v27 = vpack.c.bf16 %v92_v20, %v91_v19  ;;  %v216_v28 = vld [vmem:[#allocation7 + $0x68] sm:$0xff]  ;;  %p1395_p4 = scmp.ne.s32.totalorder %s1011_s25, %s1394_s26  ;;  %p1400_p6 = scmp.lt.s32.totalorder %s1394_s26, %s1394_s26 }
  0x51   :  { %1210 = vmatprep.subr.bf16.mxu1 %v1209_v18  ;;  %v218_v29 = vld [vmem:[#allocation7 + $0x78] sm:$0xff]  ;;  %v93_v30 = vld [vmem:[#allocation5 + $0x30] sm:$0xff]  ;;  %v1215_v32 = vpack.c.bf16 %v213_v26, %v211_v25  ;;  %v215_v34 = vld [vmem:[#allocation7 + $0x60] sm:$0xff] }
  0x52   :  { %1186 = vmatpush3.bf16.msra.mxu0 %v1185_v14  ;;  %v94_v31 = vld [vmem:[#allocation5 + $0x38] sm:$0xff]  ;;  %v1217_v33 = vpack.c.bf16 %v218_v29, %v216_v28  ;;  %v217_v35 = vld [vmem:[#allocation7 + $0x70] sm:$0xff]  ;;  %v220_v37 = vld [vmem:[#allocation7 + $0x88] sm:$0xff]  ;;  %p1401_p7 = por %p1400_p6, %p1399_p5 }
  0x53   :  { %1187 = vmatprep.subr.bf16.mxu0 %v1432_v0  ;;  %v1191_v36 = vpack.c.bf16 %v94_v31, %v93_v30  ;;  %v222_v38 = vld [vmem:[#allocation7 + $0x98] sm:$0xff]  ;;  %v95_v39 = vld [vmem:[#allocation5 + $0x40] sm:$0xff]  ;;  %v96_v40 = vld [vmem:[#allocation5 + $0x48] sm:$0xff]  ;;  %v1219_v41 = vpack.c.bf16 %v217_v35, %v215_v34  ;;  %v1435_v35 = vmov 1966171168  }
  0x54   :  { %1212 = vmatpush1.bf16.msra.mxu1 %v1211_v22  ;;  %v1221_v42 = vpack.c.bf16 %v222_v38, %v220_v37  ;;  %v219_v43 = vld [vmem:[#allocation7 + $0x80] sm:$0xff]  ;;  %v221_v44 = vld [vmem:[#allocation7 + $0x90] sm:$0xff]  ;;  %v1194_v46 = vpack.c.bf16 %v96_v40, %v95_v39  ;;  %v98_v47 = vld [vmem:[#allocation5 + $0x58] sm:$0xff]  ;;  %v353_v37 = vlaneseq  ;;  %p1402_p8 = pnand %p1401_p7, %p1395_p4 }
  0x55   :  { %1214 = vmatprep.subr.bf16.mxu1 %v1213_v24  ;;  %v97_v45 = vld [vmem:[#allocation5 + $0x50] sm:$0xff]  ;;  %v224_v48 = vld [vmem:[#allocation7 + $0xa8] sm:$0xff]  ;;  %v226_v49 = vld [vmem:[#allocation7 + $0xb8] sm:$0xff]  ;;  %v1223_v53 = vpack.c.bf16 %v221_v44, %v219_v43 }
  0x56   :  { %1189 = vmatpush3.bf16.msra.mxu0 %v1188_v27  ;;  %v1544_v50 = vld [vmem:[#allocation2] sm:$0xff]  ;;  %v1546_v51 = vld [vmem:[#allocation2 + $0x8] sm:$0xff]  ;;  %v1548_v52 = vld [vmem:[#allocation2 + $0x10] sm:$0xff]  ;;  %v1225_v58 = vpack.c.bf16 %v226_v49, %v224_v48  ;;  %v1197_v2 = vpack.c.bf16 %v98_v47, %v97_v45  ;;  %v354_v39 = vshrl.u32 %v353_v37, 7 }
  0x57   :  { %1190 = vmatprep.subr.bf16.mxu0 %v1432_v0  ;;  %v1550_v54 = vld [vmem:[#allocation2 + $0x18] sm:$0xff]  ;;  %v1552_v55 = vld [vmem:[#allocation2 + $0x20] sm:$0xff]  ;;  %v111_v56 = vrot.slane %v1546_v51, 7  ;;  %v114_v57 = vrot.slane %v1548_v52, 6  ;;  %v225_v60 = vld [vmem:[#allocation7 + $0xb0] sm:$0xff] }
  0x58   :  { %1216 = vmatpush1.bf16.msra.mxu1 %v1215_v32  ;;  %v223_v59 = vld [vmem:[#allocation7 + $0xa0] sm:$0xff]  ;;  %v1556_v61 = vld [vmem:[#allocation2 + $0x28] sm:$0xff]  ;;  %v117_v62 = vrot.slane %v1550_v54, 5  ;;  %v120_v63 = vrot.slane %v1552_v55, 4  ;;  %v230_v4 = vld [vmem:[#allocation7 + $0xd8] sm:$0xff]  ;;  %v400_v43 = vsub.s32 0, %v354_v39 }
  0x59   :  { %1218 = vmatprep.subr.bf16.mxu1 %v1217_v33  ;;  %v228_v3 = vld [vmem:[#allocation7 + $0xc8] sm:$0xff]  ;;  %v113_v5 = vsel %vm112_vm1, %v111_v56, %v1544_v50  ;;  %v99_v6 = vld [vmem:[#allocation5 + $0x60] sm:$0xff]  ;;  %v1227_v9 = vpack.c.bf16 %v225_v60, %v223_v59  ;;  %v85_v10 = vld [vmem:[#allocation2 + $0x30] sm:$0xff]  ;;  %v123_v12 = vrot.slane %v1556_v61, 3 }
  0x5a   :  { %1192 = vmatpush3.bf16.msra.mxu0 %v1191_v36  ;;  %v100_v7 = vld [vmem:[#allocation5 + $0x68] sm:$0xff]  ;;  %v116_v8 = vsel %vm115_vm2, %v114_v57, %v113_v5  ;;  %v1229_v13 = vpack.c.bf16 %v230_v4, %v228_v3  ;;  %v227_v14 = vld [vmem:[#allocation7 + $0xc0] sm:$0xff]  ;;  %v229_v15 = vld [vmem:[#allocation7 + $0xd0] sm:$0xff]  ;;  %v126_v23 = vrot.slane %v85_v10, 2  ;;  %v351_v36 = vunpack.c.l.s4 %v1435_v35 }
  0x5b   :  { %1193 = vmatprep.subr.bf16.mxu0 %v1432_v0  ;;  %v119_v11 = vsel %vm118_vm3, %v117_v62, %v116_v8  ;;  %v1200_v17 = vpack.c.bf16 %v100_v7, %v99_v6  ;;  %v232_v18 = vld [vmem:[#allocation7 + $0xe8] sm:$0xff]  ;;  %v234_v19 = vld [vmem:[#allocation7 + $0xf8] sm:$0xff]  ;;  %v101_v20 = vld [vmem:[#allocation5 + $0x70] sm:$0xff]  ;;  %v1231_v24 = vpack.c.bf16 %v229_v15, %v227_v14 }
  0x5c   :  { %1220 = vmatpush1.bf16.msra.mxu1 %v1219_v41  ;;  %v122_v16 = vsel %vm121_vm4, %v120_v63, %v119_v11  ;;  %v102_v21 = vld [vmem:[#allocation5 + $0x78] sm:$0xff]  ;;  %v1233_v26 = vpack.c.bf16 %v234_v19, %v232_v18  ;;  %v231_v27 = vld [vmem:[#allocation7 + $0xe0] sm:$0xff]  ;;  %v233_v28 = vld [vmem:[#allocation7 + $0xf0] sm:$0xff]  ;;  %v352_v38 = vunpack.c.0.s8 %v351_v36 }
  0x5d   :  { %1222 = vmatprep.subr.bf16.mxu1 %v1221_v42  ;;  %v86_v22 = vld [vmem:[#allocation2 + $0x38] sm:$0xff]  ;;  %v125_v25 = vsel %vm124_vm5, %v123_v12, %v122_v16  ;;  %v1203_v29 = vpack.c.bf16 %v102_v21, %v101_v20  ;;  %v1235_v32 = vpack.c.bf16 %v233_v28, %v231_v27  ;;  %v1591_v34 = vld [vmem:[%s1693_s3] sm:$0xf] }
  0x5e   :  { %1195 = vmatpush3.bf16.msra.mxu0 %v1194_v46  ;;  %v129_v30 = vrot.slane %v86_v22, 1  ;;  %v128_v31 = vsel %vm127_vm6, %v126_v23, %v125_v25  ;;  %v355_v40 = vsub.s32 %v352_v38, %v354_v39 }
  0x5f   :  { %1196 = vmatprep.subr.bf16.mxu0 %v1432_v0 }
  0x60   :  { %1224 = vmatpush1.bf16.msra.mxu1 %v1223_v53  ;;  %v131_v33 = vsel %vm130_vm7, %v129_v30, %v128_v31 }
  0x61   :  { %1226 = vmatprep.subr.bf16.mxu1 %v1225_v58 }
  0x62   :  { %1198 = vmatpush3.bf16.msra.mxu0 %v1197_v2 }
  0x63   :  { %1199 = vmatprep.subr.bf16.mxu0 %v1432_v0 }
  0x64   :  { %1228 = vmatpush1.bf16.msra.mxu1 %v1227_v9 }
  0x65   :  { %1230 = vmatprep.subr.bf16.mxu1 %v1229_v13 }
  0x66   :  { %1201 = vmatpush3.bf16.msra.mxu0 %v1200_v17 }
  0x67   :  { %1202 = vmatprep.subr.bf16.mxu0 %v1432_v0 }
  0x68   :  { %1232 = vmatpush1.bf16.msra.mxu1 %v1231_v24 }
  0x69   :  { %1234 = vmatprep.subr.bf16.mxu1 %v1233_v26 }
  0x6a   :  { %1204 = vmatpush3.bf16.msra.mxu0 %v1203_v29 }
  0x6b   :  { %1118 = vmatprep.subr.mxu0 %v1591_v34 }
  0x6c   :  { %1236 = vmatpush1.bf16.msra.mxu1 %v1235_v32 }
  0x6d   :  { %1116 = vmatmul.mubr.f32.vlgmr.msra.gmra.mrb[0].mxu0 %v131_v33  ;;  %1237 = vmatprep.subr.bf16.mxu1 %v1432_v0 }
  0x6f   :  { %300 = vmatmul.mubr.f32.vlgmr.msra.gmra.mrb[0].mxu1 %v1544_v50 }
  0x70   :  { %305 = vmatprep.mubr.f32.mxu1 %v1434_v1 }
  0x73   :  { %306 = vmatmul.mubr.f32.gmra.mrb[2].mxu1 %v1546_v51  ;;  %1119 = vmatpush3.xpose.msra.mxu0 %v1591_v34 }
  0x74   :  { %311 = vmatprep.mubr.f32.mxu1 %v1434_v1  ;;  %1132 = vmatprep.subr.msk.mxu0 %vm729_vm8, %v1591_v34 }
  0x77   :  { %312 = vmatmul.mubr.f32.gmra.mrb[4].mxu1 %v1548_v52 }
  0x78   :  { %317 = vmatprep.mubr.f32.mxu1 %v1434_v1 }
  0x7b   :  { %318 = vmatmul.mubr.f32.gmra.mrb[6].mxu1 %v1550_v54 }
  0x7c   :  { %323 = vmatprep.mubr.f32.mxu1 %v1434_v1 }
  0x7f   :  { %324 = vmatmul.mubr.f32.gmra.mrb[8].mxu1 %v1552_v55 }
  0x80   :  { %329 = vmatprep.mubr.f32.mxu1 %v1434_v1 }
  0x83   :  { %330 = vmatmul.mubr.f32.gmra.mrb[10].mxu1 %v1556_v61 }
  0x84   :  { %335 = vmatprep.mubr.f32.mxu1 %v1434_v1 }
  0x87   :  { %336 = vmatmul.mubr.f32.gmra.mrb[12].mxu1 %v85_v10 }
  0x88   :  { %341 = vmatprep.mubr.f32.mxu1 %v1434_v1 }
  0x8b   :  { %342 = vmatmul.mubr.f32.gmra.mrb[14].mxu1 %v86_v22 }
  0x8c   :  { %1178 = vmatprep.mubr.msk.f32.mxu1 %vm1433_vm0, %v1434_v1 }
 0x140   :  { %v199_v41 = vpop.f32.mrb[0].mxu0 }
 0x141   :  { %v356_v42 = vrot.slane %v199_v41, %v355_v40  ;;  %v1117_v44 = vpop.f32.mrb[1].mxu0  ;;  %v349_v1 = vcombine.high %v199_v41, %v199_v41 }
 0x142   :  { %v301_v45 = vpop.f32.mrb[0].mxu1 }
 0x143   :  { %v364_v46 = vcombine.high %v356_v42, %v356_v42  ;;  %v372_v47 = vrot.slane %v356_v42, %v355_v40  ;;  %v1595_v48 = vpop.f32.mrb[1].mxu1  ;;  %v363_v52 = vrot.slane %v349_v1, %v355_v40 }
 0x145   :  { %v401_v49 = vrot.slane %v372_v47, %v400_v43  ;;  %v386_v50 = vrot.slane %v364_v46, %v355_v40  ;;  %v394_v51 = vcombine.high %v372_v47, %v372_v47  ;;  %v379_v2 = vrot.slane %v363_v52, %v355_v40 }
 0x146   :  { %v307_v53 = vpop.f32.mrb[2].mxu1  ;;  %v365_v3 = vcombine.high %v363_v52, %v363_v52 }
 0x147   :  { %v438_v54 = vmul.f32 %v401_v49, %v301_v45  ;;  %v405_v55 = vrot.slane %v386_v50, %v400_v43  ;;  %v1597_v56 = vpop.f32.mrb[3].mxu1  ;;  %v409_v57 = vrot.slane %v394_v51, %v400_v43  ;;  %v396_v58 = vcombine.high %v386_v50, %v386_v50 }
 0x148   :  { %v417_v7 = vrot.slane %v379_v2, %v400_v43  ;;  %v393_v8 = vrot.slane %v365_v3, %v355_v40  ;;  %v395_v13 = vcombine.high %v379_v2, %v379_v2 }
 0x149   :  { %v439_v59 = vmul.f32 %v405_v55, %v307_v53  ;;  %1120 = vmatprep.mubr.f32.mxu0 %v438_v54  ;;  %v413_v63 = vrot.slane %v396_v58, %v400_v43 }
 0x14a   :  { %v313_v60 = vpop.f32.mrb[4].mxu1  ;;  %v421_v12 = vrot.slane %v393_v8, %v400_v43  ;;  %v425_v17 = vrot.slane %v395_v13, %v400_v43  ;;  %v397_v18 = vcombine.high %v393_v8, %v393_v8 }
 0x14b   :  { %v440_v61 = vmul.f32 %v409_v57, %v313_v60  ;;  %v1599_v62 = vpop.f32.mrb[5].mxu1  ;;  %1121 = vmatmul.mubr.f32.vlgmr.msra.gmra.mrb[2].mxu0 %v439_v59 }
 0x14c   :  { %v429_v22 = vrot.slane %v397_v18, %v400_v43  ;;  %1133 = vmatpush3.msk.msra.mxu0 %vm729_vm8, %v1591_v34 }
 0x14d   :  { %1123 = vmatprep.mubr.f32.mxu0 %v440_v61 }
 0x14e   :  { %v319_v4 = vpop.f32.mrb[6].mxu1 }
 0x14f   :  { %v441_v5 = vmul.f32 %v413_v63, %v319_v4  ;;  %v1601_v6 = vpop.f32.mrb[7].mxu1 }
 0x151   :  { %1124 = vmatmul.mubr.f32.gmra.mrb[4].mxu0 %v441_v5 }
 0x152   :  { %v325_v9 = vpop.f32.mrb[8].mxu1 }
 0x153   :  { %v442_v10 = vmul.f32 %v417_v7, %v325_v9  ;;  %v1603_v11 = vpop.f32.mrb[9].mxu1 }
 0x155   :  { %1126 = vmatprep.mubr.f32.mxu0 %v442_v10 }
 0x156   :  { %v331_v14 = vpop.f32.mrb[10].mxu1 }
 0x157   :  { %v443_v15 = vmul.f32 %v421_v12, %v331_v14  ;;  %v1605_v16 = vpop.f32.mrb[11].mxu1 }
 0x159   :  { %1127 = vmatmul.mubr.f32.gmra.mrb[6].mxu0 %v443_v15 }
 0x15a   :  { %v337_v19 = vpop.f32.mrb[12].mxu1 }
 0x15b   :  { %v444_v20 = vmul.f32 %v425_v17, %v337_v19  ;;  %v1607_v21 = vpop.f32.mrb[13].mxu1 }
 0x15d   :  { %1129 = vmatprep.mubr.f32.mxu0 %v444_v20 }
 0x15e   :  { %v343_v23 = vpop.f32.mrb[14].mxu1 }
 0x15f   :  { %v445_v24 = vmul.f32 %v429_v22, %v343_v23  ;;  %v1609_v25 = vpop.f32.mrb[15].mxu1 }
 0x161   :  { %1130 = vmatmul.mubr.f32.gmra.mrb[8].mxu0 %v445_v24 }
 0x21e   :  { %v1122_v26 = vpop.f32.mrb[2].mxu0 }
 0x21f   :  { %v560_v27 = vsel %vm552_vm9, %v1122_v26, -inf  ;;  %v513_v28 = vpop.f32.mrb[3].mxu0 }
 0x220   :  { %v561_v29 = vrot.slane %v560_v27, 4  ;;  %v553_v30 = vsel %vm552_vm9, %v513_v28, -inf }
 0x221   :  { %v554_v31 = vrot.slane %v553_v30, 4 }
 0x222   :  { %v562_v32 = vmax.f32 %v560_v27, %v561_v29 }
 0x223   :  { %v555_v33 = vmax.f32 %v553_v30, %v554_v31 }
 0x224   :  { %v563_v35 = vrot.slane %v562_v32, 2  ;;  %v1125_v36 = vpop.f32.mrb[4].mxu0 }
 0x225   :  { %v556_v37 = vrot.slane %v555_v33, 2  ;;  %v574_v38 = vsel %vm552_vm9, %v1125_v36, -inf  ;;  %v523_v39 = vpop.f32.mrb[5].mxu0 }
 0x226   :  { %v564_v40 = vmax.f32 %v562_v32, %v563_v35  ;;  %v575_v41 = vrot.slane %v574_v38, 4  ;;  %v567_v34 = vsel %vm552_vm9, %v523_v39, -inf }
 0x227   :  { %v557_v42 = vmax.f32 %v555_v33, %v556_v37  ;;  %v568_v43 = vrot.slane %v567_v34, 4 }
 0x228   :  { %v565_v44 = vrot.slane %v564_v40, 1  ;;  %v576_v1 = vmax.f32 %v574_v38, %v575_v41 }
 0x229   :  { %v558_v45 = vrot.slane %v557_v42, 1  ;;  %v569_v46 = vmax.f32 %v567_v34, %v568_v43 }
 0x22a   :  { %v566_v47 = vmax.f32 %v564_v40, %v565_v44  ;;  %v577_v49 = vrot.slane %v576_v1, 2 }
 0x22b   :  { %v559_v50 = vmax.f32 %v557_v42, %v558_v45  ;;  %v570_v51 = vrot.slane %v569_v46, 2 }
 0x22c   :  { %v610_v52 = vsub.f32 %v1122_v26, %v566_v47  ;;  %v578_v53 = vmax.f32 %v576_v1, %v577_v49  ;;  %v1128_v54 = vpop.f32.mrb[6].mxu0 }
 0x22d   :  { %v609_v55 = vsub.f32 %v513_v28, %v559_v50  ;;  %v571_v57 = vmax.f32 %v569_v46, %v570_v51  ;;  %v588_v58 = vsel %vm552_vm9, %v1128_v54, -inf  ;;  %v533_v59 = vpop.f32.mrb[7].mxu0 }
 0x22e   :  { %v619_v60 = vmul.f32 1.442695, %v610_v52  ;;  %v579_v61 = vrot.slane %v578_v53, 1  ;;  %v589_v63 = vrot.slane %v588_v58, 4  ;;  %v581_v2 = vsel %vm552_vm9, %v533_v59, -inf }
 0x22f   :  { %v617_v3 = vmul.f32 1.442695, %v609_v55  ;;  %v572_v4 = vrot.slane %v571_v57, 1  ;;  %v582_v5 = vrot.slane %v581_v2, 4 }
 0x230   :  { %1274 = vpow2.f32 %v619_v60  ;;  %v580_v7 = vmax.f32 %v578_v53, %v579_v61  ;;  %v590_v8 = vmax.f32 %v588_v58, %v589_v63 }
 0x231   :  { %1276 = vpow2.f32 %v617_v3  ;;  %v573_v9 = vmax.f32 %v571_v57, %v572_v4  ;;  %v583_v10 = vmax.f32 %v581_v2, %v582_v5 }
 0x232   :  { %v612_v12 = vsub.f32 %v1125_v36, %v580_v7  ;;  %v591_v13 = vrot.slane %v590_v8, 2 }
 0x233   :  { %v611_v14 = vsub.f32 %v523_v39, %v573_v9  ;;  %v584_v15 = vrot.slane %v583_v10, 2 }
 0x234   :  { %v623_v17 = vmul.f32 1.442695, %v612_v12  ;;  %v592_v18 = vmax.f32 %v590_v8, %v591_v13  ;;  %v1131_v19 = vpop.f32.mrb[8].mxu0 }
 0x235   :  { %v621_v20 = vmul.f32 1.442695, %v611_v14  ;;  %v585_v22 = vmax.f32 %v583_v10, %v584_v15  ;;  %v602_v23 = vsel %vm552_vm9, %v1131_v19, -inf  ;;  %v543_v24 = vpop.f32.mrb[9].mxu0 }
 0x236   :  { %1278 = vpow2.f32 %v623_v17  ;;  %v593_v26 = vrot.slane %v592_v18, 1  ;;  %v603_v27 = vrot.slane %v602_v23, 4  ;;  %v595_v28 = vsel %vm552_vm9, %v543_v24, -inf }
 0x237   :  { %1280 = vpow2.f32 %v621_v20  ;;  %v586_v29 = vrot.slane %v585_v22, 1  ;;  %v596_v30 = vrot.slane %v595_v28, 4 }
 0x238   :  { %v594_v31 = vmax.f32 %v592_v18, %v593_v26  ;;  %v604_v32 = vmax.f32 %v602_v23, %v603_v27 }
 0x239   :  { %v587_v33 = vmax.f32 %v585_v22, %v586_v29  ;;  %v597_v35 = vmax.f32 %v595_v28, %v596_v30 }
 0x23a   :  { %v1621_v36 = vpop.eup %1274  ;;  %v614_v37 = vsub.f32 %v1128_v54, %v594_v31  ;;  %v605_v38 = vrot.slane %v604_v32, 2 }
 0x23b   :  { %v1623_v39 = vpop.eup %1276  ;;  %v640_v40 = vsel %vm552_vm9, %v1621_v36, 0.0  ;;  %v613_v41 = vsub.f32 %v533_v59, %v587_v33  ;;  %v598_v34 = vrot.slane %v597_v35, 2 }
 0x23c   :  { %v641_v42 = vrot.slane %v640_v40, 4  ;;  %v633_v43 = vsel %vm552_vm9, %v1623_v39, 0.0  ;;  %v627_v44 = vmul.f32 1.442695, %v614_v37  ;;  %v606_v1 = vmax.f32 %v604_v32, %v605_v38 }
 0x23d   :  { %v634_v45 = vrot.slane %v633_v43, 4  ;;  %v625_v46 = vmul.f32 1.442695, %v613_v41  ;;  %v599_v47 = vmax.f32 %v597_v35, %v598_v34 }
 0x23e   :  { %v642_v49 = vadd.f32 %v641_v42, %v640_v40  ;;  %1282 = vpow2.f32 %v627_v44  ;;  %v607_v50 = vrot.slane %v606_v1, 1 }
 0x23f   :  { %v635_v51 = vadd.f32 %v634_v45, %v633_v43  ;;  %1284 = vpow2.f32 %v625_v46  ;;  %v600_v52 = vrot.slane %v599_v47, 1 }
 0x240   :  { %v1629_v53 = vpop.eup %1278  ;;  %v643_v54 = vrot.slane %v642_v49, 2  ;;  %v608_v55 = vmax.f32 %v606_v1, %v607_v50 }
 0x241   :  { %v1631_v57 = vpop.eup %1280  ;;  %v636_v58 = vrot.slane %v635_v51, 2  ;;  %v654_v59 = vsel %vm552_vm9, %v1629_v53, 0.0  ;;  %v601_v60 = vmax.f32 %v599_v47, %v600_v52 }
 0x242   :  { %v644_v61 = vadd.f32 %v643_v54, %v642_v49  ;;  %v655_v63 = vrot.slane %v654_v59, 4  ;;  %v647_v2 = vsel %vm552_vm9, %v1631_v57, 0.0  ;;  %v616_v3 = vsub.f32 %v1131_v19, %v608_v55 }
 0x243   :  { %v637_v4 = vadd.f32 %v636_v58, %v635_v51  ;;  %v648_v5 = vrot.slane %v647_v2, 4  ;;  %v615_v7 = vsub.f32 %v543_v24, %v601_v60 }
 0x244   :  { %v645_v8 = vrot.slane %v644_v61, 1  ;;  %v656_v9 = vadd.f32 %v655_v63, %v654_v59  ;;  %v631_v10 = vmul.f32 1.442695, %v616_v3 }
 0x245   :  { %v638_v12 = vrot.slane %v637_v4, 1  ;;  %v649_v13 = vadd.f32 %v648_v5, %v647_v2  ;;  %v629_v14 = vmul.f32 1.442695, %v615_v7 }
 0x246   :  { %v646_v15 = vadd.f32 %v645_v8, %v644_v61  ;;  %v657_v17 = vrot.slane %v656_v9, 2  ;;  %1286 = vpow2.f32 %v631_v10 }
 0x247   :  { %v639_v18 = vadd.f32 %v638_v12, %v637_v4  ;;  %v650_v20 = vrot.slane %v649_v13, 2  ;;  %1288 = vpow2.f32 %v629_v14 }
 0x248   :  { %v1283_v22 = vpop.eup %1282  ;;  %1290 = vrcp.f32 %v646_v15  ;;  %v658_v23 = vadd.f32 %v657_v17, %v656_v9 }
 0x249   :  { %v1285_v26 = vpop.eup %1284  ;;  %v651_v19 = vadd.f32 %v650_v20, %v649_v13  ;;  %v668_v27 = vsel %vm552_vm9, %v1283_v22, 0.0  ;;  %1292 = vrcp.f32 %v639_v18  ;;  %v894_v20 = vld [vmem:[#allocation8] sm:$0xff] }
 0x24a   :  { %v659_v24 = vrot.slane %v658_v23, 1  ;;  %v669_v28 = vrot.slane %v668_v27, 4  ;;  %v661_v29 = vsel %vm552_vm9, %v1285_v26, 0.0 }
 0x24b   :  { %v652_v30 = vrot.slane %v651_v19, 1  ;;  %v662_v31 = vrot.slane %v661_v29, 4 }
 0x24c   :  { %v660_v32 = vadd.f32 %v659_v24, %v658_v23  ;;  %v670_v33 = vadd.f32 %v669_v28, %v668_v27  ;;  %v895_v23 = vld [vmem:[#allocation8 + $0x8] sm:$0xff]  ;;  %v898_v24 = vld [vmem:[#allocation8 + $0x20] sm:$0xff] }
 0x24d   :  { %v653_v35 = vadd.f32 %v652_v30, %v651_v19  ;;  %v663_v37 = vadd.f32 %v662_v31, %v661_v29  ;;  %v1238_v19 = vpack.c.bf16 %v895_v23, %v894_v20  ;;  %v899_v28 = vld [vmem:[#allocation8 + $0x28] sm:$0xff]  ;;  %v900_v30 = vld [vmem:[#allocation8 + $0x30] sm:$0xff]  ;;  %v901_v31 = vld [vmem:[#allocation8 + $0x38] sm:$0xff] }
 0x24e   :  { %v671_v38 = vrot.slane %v670_v33, 2  ;;  %1294 = vrcp.f32 %v660_v32  ;;  %v1244_v29 = vpack.c.bf16 %v899_v28, %v898_v24  ;;  %v1247_v32 = vpack.c.bf16 %v901_v31, %v900_v30 }
 0x24f   :  { %v664_v40 = vrot.slane %v663_v37, 2  ;;  %1296 = vrcp.f32 %v653_v35  ;;  %1239 = vmatpush3.bf16.msra.mxu1 %v1238_v19  ;;  %v903_v35 = vld [vmem:[#allocation8 + $0x48] sm:$0xff] }
 0x250   :  { %v1287_v41 = vpop.eup %1286  ;;  %v672_v34 = vadd.f32 %v671_v38, %v670_v33  ;;  %1240 = vmatprep.subr.bf16.mxu1 %v1432_v0  ;;  %v902_v33 = vld [vmem:[#allocation8 + $0x40] sm:$0xff]  ;;  %v904_v38 = vld [vmem:[#allocation8 + $0x50] sm:$0xff] }
 0x251   :  { %v1289_v42 = vpop.eup %1288  ;;  %v665_v43 = vadd.f32 %v664_v40, %v663_v37  ;;  %v682_v44 = vsel %vm552_vm9, %v1287_v41, 0.0  ;;  %v1250_v37 = vpack.c.bf16 %v903_v35, %v902_v33  ;;  %v905_v40 = vld [vmem:[#allocation8 + $0x58] sm:$0xff] }
 0x252   :  { %v1291_v1 = vpop.eup %1290  ;;  %v673_v45 = vrot.slane %v672_v34, 1  ;;  %v683_v46 = vrot.slane %v682_v44, 4  ;;  %v675_v47 = vsel %vm552_vm9, %v1289_v42, 0.0 }
 0x253   :  { %v1293_v49 = vpop.eup %1292  ;;  %v666_v50 = vrot.slane %v665_v43, 1  ;;  %v676_v51 = vrot.slane %v675_v47, 4  ;;  %v698_v58 = vmul.f32 %v1291_v1, %v1621_v36  ;;  %v909_v1 = vld [vmem:[#allocation8 + $0x78] sm:$0xff] }
 0x254   :  { %v674_v52 = vadd.f32 %v673_v45, %v672_v34  ;;  %v684_v54 = vadd.f32 %v683_v46, %v682_v44  ;;  %v697_v55 = vmul.f32 %v1293_v49, %v1623_v39  ;;  %v906_v34 = vld [vmem:[#allocation8 + $0x60] sm:$0xff]  ;;  %v908_v44 = vld [vmem:[#allocation8 + $0x70] sm:$0xff] }
 0x255   :  { %v667_v59 = vadd.f32 %v666_v50, %v665_v43  ;;  %v677_v60 = vadd.f32 %v676_v51, %v675_v47  ;;  %v1259_v45 = vpack.c.bf16 %v909_v1, %v908_v44 }
 0x256   :  { %v685_v61 = vrot.slane %v684_v54, 2  ;;  %1134 = vmatprep.mubr.msk.f32.mxu0 %vm552_vm9, %v697_v55  ;;  %1298 = vrcp.f32 %v674_v52 }
 0x257   :  { %v678_v63 = vrot.slane %v677_v60, 2  ;;  %1135 = vmatmul.mubr.msk.f32.vlgmr.msra.gmra.mrb[10].mxu0 %vm552_vm9, %v698_v58  ;;  %1300 = vrcp.f32 %v667_v59 }
 0x258   :  { %v1295_v2 = vpop.eup %1294  ;;  %v686_v3 = vadd.f32 %v685_v61, %v684_v54 }
 0x259   :  { %v1297_v4 = vpop.eup %1296  ;;  %v679_v5 = vadd.f32 %v678_v63, %v677_v60  ;;  %v700_v36 = vmul.f32 %v1295_v2, %v1629_v53 }
 0x25a   :  { %v687_v7 = vrot.slane %v686_v3, 1  ;;  %v699_v8 = vmul.f32 %v1297_v4, %v1631_v57 }
 0x25b   :  { %v680_v39 = vrot.slane %v679_v5, 1 }
 0x25c   :  { %v688_v9 = vadd.f32 %v687_v7, %v686_v3  ;;  %1137 = vmatprep.mubr.msk.f32.mxu0 %vm552_vm9, %v699_v8 }
 0x25d   :  { %v681_v10 = vadd.f32 %v680_v39, %v679_v5  ;;  %1138 = vmatmul.mubr.msk.f32.gmra.mrb[12].mxu0 %vm552_vm9, %v700_v36 }
 0x25e   :  { %1302 = vrcp.f32 %v688_v9 }
 0x25f   :  { %1304 = vrcp.f32 %v681_v10 }
 0x260   :  { %v1299_v12 = vpop.eup %1298 }
 0x261   :  { %v1301_v13 = vpop.eup %1300  ;;  %v702_v15 = vmul.f32 %v1299_v12, %v1283_v22  ;;  %v897_v22 = vld [vmem:[#allocation8 + $0x18] sm:$0xff] }
 0x262   :  { %v701_v14 = vmul.f32 %v1301_v13, %v1285_v26  ;;  %v896_v26 = vld [vmem:[#allocation8 + $0x10] sm:$0xff] }
 0x263   :  { %v1241_v27 = vpack.c.bf16 %v897_v22, %v896_v26 }
 0x264   :  { %1140 = vmatprep.mubr.msk.f32.mxu0 %vm552_vm9, %v701_v14 }
 0x265   :  { %1141 = vmatmul.mubr.msk.f32.gmra.mrb[14].mxu0 %vm552_vm9, %v702_v15  ;;  %1242 = vmatpush3.bf16.msra.mxu1 %v1241_v27 }
 0x266   :  { %1243 = vmatprep.subr.bf16.mxu1 %v1432_v0 }
 0x268   :  { %v1303_v57 = vpop.eup %1302 }
 0x269   :  { %v1305_v17 = vpop.eup %1304  ;;  %v704_v53 = vmul.f32 %v1303_v57, %v1287_v41  ;;  %1245 = vmatpush3.bf16.msra.mxu1 %v1244_v29  ;;  %v1253_v41 = vpack.c.bf16 %v905_v40, %v904_v38 }
 0x26a   :  { %v703_v18 = vmul.f32 %v1305_v17, %v1289_v42  ;;  %1246 = vmatprep.subr.bf16.mxu1 %v1432_v0  ;;  %v907_v42 = vld [vmem:[#allocation8 + $0x68] sm:$0xff] }
 0x26b   :  { %v1256_v43 = vpack.c.bf16 %v907_v42, %v906_v34 }
 0x26c   :  { %1143 = vmatprep.mubr.msk.f32.mxu0 %vm552_vm9, %v703_v18 }
 0x26d   :  { %1144 = vmatmul.mubr.msk.f32.gmra.mrb[16].mxu0 %vm552_vm9, %v704_v53  ;;  %1248 = vmatpush3.bf16.msra.mxu1 %v1247_v32 }
 0x26e   :  { %1249 = vmatprep.subr.bf16.mxu1 %v1432_v0 }
 0x271   :  { %1251 = vmatpush3.bf16.msra.mxu1 %v1250_v37 }
 0x272   :  { %1252 = vmatprep.subr.bf16.mxu1 %v1432_v0 }
 0x275   :  { %1254 = vmatpush3.bf16.msra.mxu1 %v1253_v41 }
 0x276   :  { %1255 = vmatprep.subr.bf16.mxu1 %v1432_v0 }
 0x279   :  { %1257 = vmatpush3.bf16.msra.mxu1 %v1256_v43 }
 0x27a   :  { %1258 = vmatprep.subr.bf16.mxu1 %v1432_v0 }
 0x27d   :  { %1260 = vmatpush3.bf16.msra.mxu1 %v1259_v45 }
 0x32a   :  { %v1136_v46 = vpop.f32.mrb[10].mxu0 }
 0x32b   :  { %v839_v47 = vmul.f32 %v1136_v46, %v1597_v56  ;;  %v799_v49 = vpop.f32.mrb[11].mxu0 }
 0x32c   :  { %v838_v50 = vmul.f32 %v799_v49, %v1595_v48 }
 0x32d   :  { %v852_v51 = vrot.slane %v839_v47, 4 }
 0x32e   :  { %v846_v52 = vrot.slane %v838_v50, 4 }
 0x32f   :  { %v853_v54 = vadd.f32 %v852_v51, %v839_v47 }
 0x330   :  { %v847_v55 = vadd.f32 %v846_v52, %v838_v50  ;;  %v1139_v58 = vpop.f32.mrb[12].mxu0 }
 0x331   :  { %v854_v59 = vrot.slane %v853_v54, 2  ;;  %v841_v60 = vmul.f32 %v1139_v58, %v1601_v6  ;;  %v809_v61 = vpop.f32.mrb[13].mxu0 }
 0x332   :  { %v848_v0 = vrot.slane %v847_v55, 2  ;;  %v840_v63 = vmul.f32 %v809_v61, %v1599_v62 }
 0x333   :  { %v855_v2 = vadd.f32 %v854_v59, %v853_v54  ;;  %v864_v3 = vrot.slane %v841_v60, 4 }
 0x334   :  { %v849_v4 = vadd.f32 %v848_v0, %v847_v55  ;;  %v858_v5 = vrot.slane %v840_v63, 4  ;;  %v1030_v55 = vld [vmem:[%s1695_s5] ss:$0 sm:$0xff] }
 0x335   :  { %v856_v56 = vrot.slane %v855_v2, 1  ;;  %v865_v7 = vadd.f32 %v864_v3, %v841_v60 }
 0x336   :  { %v850_v8 = vrot.slane %v849_v4, 1  ;;  %v859_v48 = vadd.f32 %v858_v5, %v840_v63 }
 0x337   :  { %v857_v39 = vadd.f32 %v856_v56, %v855_v2  ;;  %v866_v36 = vrot.slane %v865_v7, 2 }
 0x338   :  { %v851_v9 = vadd.f32 %v850_v8, %v849_v4  ;;  %v860_v10 = vrot.slane %v859_v48, 2  ;;  %v1142_v12 = vpop.f32.mrb[14].mxu0 }
 0x339   :  { %v867_v13 = vadd.f32 %v866_v36, %v865_v7  ;;  %v843_v6 = vmul.f32 %v1142_v12, %v1605_v16  ;;  %v819_v14 = vpop.f32.mrb[15].mxu0 }
 0x33a   :  { %v925_v15 = vsel %vm112_vm1, %v857_v39, %v851_v9  ;;  %v861_v62 = vadd.f32 %v860_v10, %v859_v48  ;;  %v842_v57 = vmul.f32 %v819_v14, %v1603_v11 }
 0x33b   :  { %v868_v17 = vrot.slane %v867_v13, 1  ;;  %v876_v18 = vrot.slane %v843_v6, 4 }
 0x33c   :  { %v862_v53 = vrot.slane %v861_v62, 1  ;;  %v870_v20 = vrot.slane %v842_v57, 4 }
 0x33d   :  { %v877_v23 = vadd.f32 %v876_v18, %v843_v6  ;;  %v869_v22 = vadd.f32 %v868_v17, %v867_v13 }
 0x33e   :  { %v863_v19 = vadd.f32 %v862_v53, %v861_v62  ;;  %v871_v26 = vadd.f32 %v870_v20, %v842_v57 }
 0x33f   :  { %v878_v27 = vrot.slane %v877_v23, 2 }
 0x340   :  { %v926_v24 = vsel %vm115_vm2, %v863_v19, %v925_v15  ;;  %v872_v28 = vrot.slane %v871_v26, 2  ;;  %v1145_v29 = vpop.f32.mrb[16].mxu0 }
 0x341   :  { %v879_v16 = vadd.f32 %v878_v27, %v877_v23  ;;  %v927_v30 = vsel %vm118_vm3, %v869_v22, %v926_v24  ;;  %v845_v31 = vmul.f32 %v1145_v29, %v1609_v25  ;;  %v829_v32 = vpop.f32.mrb[17].mxu0 }
 0x342   :  { %v873_v11 = vadd.f32 %v872_v28, %v871_v26  ;;  %v844_v33 = vmul.f32 %v829_v32, %v1607_v21 }
 0x343   :  { %v880_v35 = vrot.slane %v879_v16, 1  ;;  %v888_v37 = vrot.slane %v845_v31, 4 }
 0x344   :  { %v874_v38 = vrot.slane %v873_v11, 1  ;;  %v882_v40 = vrot.slane %v844_v33, 4 }
 0x345   :  { %v889_v41 = vadd.f32 %v888_v37, %v845_v31  ;;  %v881_v43 = vadd.f32 %v880_v35, %v879_v16 }
 0x346   :  { %v875_v34 = vadd.f32 %v874_v38, %v873_v11  ;;  %v883_v42 = vadd.f32 %v882_v40, %v844_v33 }
 0x347   :  { %v890_v44 = vrot.slane %v889_v41, 2 }
 0x348   :  { %v928_v1 = vsel %vm121_vm4, %v875_v34, %v927_v30  ;;  %v884_v45 = vrot.slane %v883_v42, 2 }
 0x349   :  { %v891_v46 = vadd.f32 %v890_v44, %v889_v41  ;;  %v929_v47 = vsel %vm124_vm5, %v881_v43, %v928_v1 }
 0x34a   :  { %v885_v25 = vadd.f32 %v884_v45, %v883_v42 }
 0x34b   :  { %v892_v49 = vrot.slane %v891_v46, 1 }
 0x34c   :  { %v886_v50 = vrot.slane %v885_v25, 1 }
 0x34d   :  { %v893_v21 = vadd.f32 %v892_v49, %v891_v46 }
 0x34e   :  { %v887_v51 = vadd.f32 %v886_v50, %v885_v25 }
 0x350   :  { %v930_v52 = vsel %vm127_vm6, %v887_v51, %v929_v47 }
 0x351   :  { %v931_v54 = vsel %vm130_vm7, %v893_v21, %v930_v52 }
 0x352   :  { %1179 = vmatmul.mubr.f32.vlgmr.msra.gmra.mrb[16].mxu1 %v931_v54 }
 0x425   :  { %v999_v58 = vpop.f32.mrb[16].mxu1 }
 0x426   :  { %v1000_v59 = vadd.f32 %v1030_v55, %v999_v58  ;;  %v1180_v60 = vpop.f32.mrb[17].mxu1 }
 0x428   :  { %1003 = vst [vmem:[#allocation10] sm:$0xff] %v1000_v59 }
 0x429   :  { %1405 = shalt.err (!%p1402_p8)
}
 0x42a   :  { %s1406_s29 = scalar_lea.hbm %s1696_s6, 128 }
 0x42b   :  { %p1407_p9 = scmp.ne.s32.totalorder %s1696_s6, %s1406_s29  ;;  %p1410_p10 = scmp.lt.u32.totalorder %s1406_s29, %s1696_s6 }
 0x42d   :  { %p1412_p11 = pnand %p1410_p10, %p1407_p9 }
 0x42f   :  { %1415 = shalt.err (!%p1412_p11)
}
 0x430   :  { %1013 = dma.vmem_to_hbm [thread:$0]  %s1011_s25, 128, %s1696_s6, [#allocation4]  }
 0x431   :  { %1422 = dma.done.wait [#allocation4], 128  }
 0x432   :  { %1423 = vsyncadd [#allocation4], 4294967168 }
 0x433   :  { %1017 = vsyncpa [#allocation3], 1 }
 0x434   :  { %1018 = vsyncpa [#allocation6], 1 }
 0x435   :  { %1019 = vsyncpa [#allocation9], 1 }
 0x436   :  { %1020 = vsyncpa [#allocation4], 1 }

</bundles_post_ra>
